<compile_context>
chip_gen: v6e
topology: v6e:2x2x1
jax: 0.10.0
libtpu: 0.0.40
codegen_flags: <defaults>
</compile_context>

<pallas_src>
import jax
import jax.numpy as jnp
from jax.experimental import pallas as pl
from jax.experimental.pallas import tpu as pltpu


# ----------------------------- Pallas kernel --------------------------------
def fm_kernel(fm_ref, x_ref, lin_ref, ctab_ref, out_ref):
    # fm_ref:   (TB, D*E)  gathered (unscaled) discrete FM rows, flattened
    # x_ref:    (TB, F)    raw feature values (discrete codes + continuous)
    # lin_ref:  (TB, D)    gathered linear-embedding scalars (discrete feats)
    # ctab_ref: (C, E)     continuous-feature FM table (shared by all tiles)
    # out_ref:  (TB, 1)    sigmoid(linear + cross)
    TB = x_ref.shape[0]
    D = lin_ref.shape[1]
    C, E = ctab_ref.shape

    x = x_ref[...].astype(jnp.float32)            # (TB, F)
    ctab = ctab_ref[...].astype(jnp.float32)      # (C, E)

    sum_f = jnp.zeros((TB, E), jnp.float32)
    sum_sq = jnp.zeros((TB, E), jnp.float32)

    # Discrete features: 128-aligned static lane slice per feature, scaled by
    # the raw feature value (matches the PyTorch semantics).
    for f in range(D):
        v = fm_ref[:, f * E:(f + 1) * E].astype(jnp.float32) * x[:, f:f + 1]
        sum_f = sum_f + v
        sum_sq = sum_sq + v * v

    # Continuous features: shared embedding row scaled by the feature value.
    for c in range(C):
        v = ctab[c:c + 1, :] * x[:, D + c:D + c + 1]
        sum_f = sum_f + v
        sum_sq = sum_sq + v * v

    cross = 0.5 * jnp.sum(sum_f * sum_f - sum_sq, axis=1, keepdims=True)

    linear = jnp.sum(lin_ref[...].astype(jnp.float32), axis=1, keepdims=True)
    if C > 0:
        linear = linear + jnp.sum(x[:, D:], axis=1, keepdims=True)

    out_ref[...] = jax.nn.sigmoid(linear + cross).astype(out_ref.dtype)


# ------------------------------ wrapper --------------------------------------
def fm_pallas(fm_dis, x, lin_dis, conti_tbl, *, tb=512):
    """fm_dis: (B, D*E) f32, x: (B, F), lin_dis: (B, D), conti_tbl: (C, E)."""
    B, DE = fm_dis.shape
    F = x.shape[1]
    D = lin_dis.shape[1]
    C, E = conti_tbl.shape
    assert DE == D * E and F == D + C

    # Batch tile: multiple of 8 sublanes, capped by padded batch.
    tb = int(tb)
    tb = max(8, min(tb, ((B + 7) // 8) * 8))
    tb = (tb // 8) * 8
    b_pad = ((B + tb - 1) // tb) * tb
    if b_pad != B:
        pad = ((0, b_pad - B), (0, 0))
        fm_dis = jnp.pad(fm_dis, pad)
        x = jnp.pad(x, pad)
        lin_dis = jnp.pad(lin_dis, pad)

    grid = (b_pad // tb,)
    out = pl.pallas_call(
        fm_kernel,
        out_shape=jax.ShapeDtypeStruct((b_pad, 1), jnp.float32),
        grid=grid,
        in_specs=[
            pl.BlockSpec((tb, DE), lambda i: (i, 0)),   # discrete FM rows
            pl.BlockSpec((tb, F), lambda i: (i, 0)),    # raw feature values
            pl.BlockSpec((tb, D), lambda i: (i, 0)),    # linear weights
            pl.BlockSpec((C, E), lambda i: (0, 0)),     # shared conti table
        ],
        out_specs=pl.BlockSpec((tb, 1), lambda i: (i, 0)),
        compiler_params=pltpu.CompilerParams(
            dimension_semantics=("parallel",)),
    )(fm_dis, x, lin_dis, conti_tbl)
    return out[:B]


# ------------------------- parameter construction ----------------------------
def init_params(key, dis_feafield_size, conti_feature_num, embedding_size):
    """Deterministic xavier-uniform-style init of all embedding tables."""
    params = {"linear": [], "fm": []}
    keys = jax.random.split(key, 2 * len(dis_feafield_size) + conti_feature_num)
    ki = 0
    for fea_size in dis_feafield_size:
        bound = (6.0 / (fea_size + 1)) ** 0.5
        params["linear"].append(
            jax.random.uniform(keys[ki], (fea_size, 1), jnp.float32,
                               -bound, bound))
        ki += 1
    for fea_size in dis_feafield_size:
        bound = (6.0 / (fea_size + embedding_size)) ** 0.5
        params["fm"].append(
            jax.random.uniform(keys[ki], (fea_size, embedding_size),
                               jnp.float32, -bound, bound))
        ki += 1
    for _ in range(conti_feature_num):
        bound = (6.0 / (1 + embedding_size)) ** 0.5
        params["fm"].append(
            jax.random.uniform(keys[ki], (1, embedding_size),
                               jnp.float32, -bound, bound))
        ki += 1
    return params


# ------------------------------ FM forward -----------------------------------
def fm_forward(X, params, dis_fea_num, embedding_size, *, tb=512):
    """Gather embeddings (plain JAX glue), then run the Pallas kernel."""
    B, F = X.shape
    C = F - dis_fea_num
    idx = X[:, :dis_fea_num].astype(jnp.int32)

    # Linear weights for discrete features: (B, D)
    lin_dis = jnp.stack(
        [params["linear"][i][idx[:, i], 0] for i in range(dis_fea_num)],
        axis=1)

    # Gathered (unscaled) discrete FM rows, flattened: (B, D*E)
    fm_dis = jnp.concatenate(
        [params["fm"][i][idx[:, i]] for i in range(dis_fea_num)], axis=1)

    # Small shared continuous-feature FM table: (C, E) — NOT broadcast to B.
    conti_tbl = jnp.concatenate(
        [params["fm"][dis_fea_num + i] for i in range(C)], axis=0)

    return fm_pallas(fm_dis, X, lin_dis, conti_tbl, tb=tb)


# ------------------------------ reference ------------------------------------
def fm_reference(X, params, dis_fea_num, embedding_size):
    B, F = X.shape
    C = F - dis_fea_num
    dis_vals = X[:, :dis_fea_num]
    conti_vals = X[:, dis_fea_num:]
    idx = dis_vals.astype(jnp.int32)

    lin_parts = [params["linear"][i][idx[:, i], 0:1]
                 for i in range(dis_fea_num)]
    lin_parts.append(conti_vals)
    linear_part = jnp.sum(jnp.concatenate(lin_parts, axis=1),
                          axis=1, keepdims=True)

    fm_rows = [params["fm"][i][idx[:, i]] * dis_vals[:, i:i + 1]
               for i in range(dis_fea_num)]
    for i in range(C):
        fm_rows.append(
            jnp.broadcast_to(params["fm"][dis_fea_num + i][0],
                             (B, embedding_size)) * conti_vals[:, i:i + 1])
    fm_vecs = jnp.stack(fm_rows, axis=1)                 # (B, F, E)
    square_of_sum = jnp.sum(fm_vecs, axis=1, keepdims=True) ** 2
    sum_of_square = jnp.sum(fm_vecs * fm_vecs, axis=1, keepdims=True)
    cross_term = 0.5 * jnp.sum(square_of_sum - sum_of_square, axis=2)
    return jax.nn.sigmoid(linear_part + cross_term)


# --------------------------------- main ---------------------------------------
if __name__ == "__main__":
    # Module config (small, deterministic):
    dis_feafield_size = [16, 8, 32, 12]      # vocab sizes of discrete fields
    dis_fea_num = len(dis_feafield_size)     # 4 discrete features
    feature_num = 8                          # 4 discrete + 4 continuous
    conti_feature_num = feature_num - dis_fea_num
    embedding_size = 128
    B = 32
    TB = 8   # small tile so the test exercises a multi-step (pipelined) grid

    key = jax.random.PRNGKey(0)
    k_param, k_dis, k_conti = jax.random.split(key, 3)

    params = init_params(k_param, dis_feafield_size,
                         conti_feature_num, embedding_size)

    # Discrete feature values: valid indices stored as floats (as in PyTorch).
    dis_cols = []
    dks = jax.random.split(k_dis, dis_fea_num)
    for i, fea_size in enumerate(dis_feafield_size):
        dis_cols.append(
            jax.random.randint(dks[i], (B,), 0, fea_size).astype(jnp.float32))
    dis_block = jnp.stack(dis_cols, axis=1)                       # (B, D)
    conti_block = jax.random.normal(k_conti, (B, conti_feature_num),
                                    jnp.float32)                  # (B, C)
    X = jnp.concatenate([dis_block, conti_block], axis=1)         # (B, F)

    out = fm_forward(X, params, dis_fea_num, embedding_size, tb=TB)
    out = jax.block_until_ready(out)

    ref = fm_reference(X, params, dis_fea_num, embedding_size)
    assert out.shape == (B, 1), out.shape
    assert jnp.allclose(out, ref, atol=1e-5, rtol=1e-5), (
        "Pallas output mismatch vs reference")

    print("KERNEL_OK")
</pallas_src>

<mosaic_0001>
module attributes {stable_mosaic.version = 11 : i64} {
  func.func @fm_kernel(%arg0: i32, %arg1: memref<8x512xf32, #tpu.memory_space<vmem>>, %arg2: memref<8x8xf32, #tpu.memory_space<vmem>>, %arg3: memref<8x4xf32, #tpu.memory_space<vmem>>, %arg4: memref<4x128xf32, #tpu.memory_space<vmem>>, %arg5: memref<8x1xf32, #tpu.memory_space<vmem>>) attributes {dimension_semantics = [#tpu.dimension_semantics<parallel>], iteration_bounds = array<i64: 4>, scalar_prefetch = 0 : i64, scratch_operands = 0 : i64, tpu.core_type = #tpu.core_type<tc>, window_params = [{transform_indices = @transform_0, window_bounds = array<i64: 8, 512>}, {transform_indices = @transform_1, window_bounds = array<i64: 8, 8>}, {transform_indices = @transform_2, window_bounds = array<i64: 8, 4>}, {pipeline_mode = #tpu.pipeline_mode<synchronous>, transform_indices = @transform_3, window_bounds = array<i64: 4, 128>}, {transform_indices = @transform_4, window_bounds = array<i64: 8, 1>}]} {
    %c0 = arith.constant 0 : index
    %c0_0 = arith.constant 0 : index
    %0 = vector.load %arg2[%c0, %c0_0] : memref<8x8xf32, #tpu.memory_space<vmem>>, vector<8x8xf32>
    %c0_1 = arith.constant 0 : index
    %c0_2 = arith.constant 0 : index
    %1 = vector.load %arg4[%c0_1, %c0_2] : memref<4x128xf32, #tpu.memory_space<vmem>>, vector<4x128xf32>
    %cst = arith.constant 0.000000e+00 : f32
    %2 = vector.broadcast %cst : f32 to vector<8x128xf32>
    %cst_3 = arith.constant 0.000000e+00 : f32
    %3 = vector.broadcast %cst_3 : f32 to vector<8x128xf32>
    %c0_4 = arith.constant 0 : index
    %c0_5 = arith.constant 0 : index
    %4 = vector.load %arg1[%c0_4, %c0_5] : memref<8x512xf32, #tpu.memory_space<vmem>>, vector<8x128xf32>
    %5 = vector.extract_strided_slice %0 {offsets = [0, 0], sizes = [8, 1], strides = [1, 1]} : vector<8x8xf32> to vector<8x1xf32>
    %6 = vector.broadcast %5 : vector<8x1xf32> to vector<8x128xf32>
    %7 = arith.mulf %4, %6 : vector<8x128xf32>
    %8 = arith.addf %2, %7 : vector<8x128xf32>
    %9 = arith.mulf %7, %7 : vector<8x128xf32>
    %10 = arith.addf %3, %9 : vector<8x128xf32>
    %c0_6 = arith.constant 0 : index
    %c128 = arith.constant 128 : index
    %11 = vector.load %arg1[%c0_6, %c128] : memref<8x512xf32, #tpu.memory_space<vmem>>, vector<8x128xf32>
    %12 = vector.extract_strided_slice %0 {offsets = [0, 1], sizes = [8, 1], strides = [1, 1]} : vector<8x8xf32> to vector<8x1xf32>
    %13 = vector.broadcast %12 : vector<8x1xf32> to vector<8x128xf32>
    %14 = arith.mulf %11, %13 : vector<8x128xf32>
    %15 = arith.addf %8, %14 : vector<8x128xf32>
    %16 = arith.mulf %14, %14 : vector<8x128xf32>
    %17 = arith.addf %10, %16 : vector<8x128xf32>
    %c0_7 = arith.constant 0 : index
    %c256 = arith.constant 256 : index
    %18 = vector.load %arg1[%c0_7, %c256] : memref<8x512xf32, #tpu.memory_space<vmem>>, vector<8x128xf32>
    %19 = vector.extract_strided_slice %0 {offsets = [0, 2], sizes = [8, 1], strides = [1, 1]} : vector<8x8xf32> to vector<8x1xf32>
    %20 = vector.broadcast %19 : vector<8x1xf32> to vector<8x128xf32>
    %21 = arith.mulf %18, %20 : vector<8x128xf32>
    %22 = arith.addf %15, %21 : vector<8x128xf32>
    %23 = arith.mulf %21, %21 : vector<8x128xf32>
    %24 = arith.addf %17, %23 : vector<8x128xf32>
    %c0_8 = arith.constant 0 : index
    %c384 = arith.constant 384 : index
    %25 = vector.load %arg1[%c0_8, %c384] : memref<8x512xf32, #tpu.memory_space<vmem>>, vector<8x128xf32>
    %26 = vector.extract_strided_slice %0 {offsets = [0, 3], sizes = [8, 1], strides = [1, 1]} : vector<8x8xf32> to vector<8x1xf32>
    %27 = vector.broadcast %26 : vector<8x1xf32> to vector<8x128xf32>
    %28 = arith.mulf %25, %27 : vector<8x128xf32>
    %29 = arith.addf %22, %28 : vector<8x128xf32>
    %30 = arith.mulf %28, %28 : vector<8x128xf32>
    %31 = arith.addf %24, %30 : vector<8x128xf32>
    %32 = vector.extract_strided_slice %1 {offsets = [0, 0], sizes = [1, 128], strides = [1, 1]} : vector<4x128xf32> to vector<1x128xf32>
    %33 = vector.extract_strided_slice %0 {offsets = [0, 4], sizes = [8, 1], strides = [1, 1]} : vector<8x8xf32> to vector<8x1xf32>
    %34 = vector.broadcast %32 : vector<1x128xf32> to vector<8x128xf32>
    %35 = vector.broadcast %33 : vector<8x1xf32> to vector<8x128xf32>
    %36 = arith.mulf %34, %35 : vector<8x128xf32>
    %37 = arith.addf %29, %36 : vector<8x128xf32>
    %38 = arith.mulf %36, %36 : vector<8x128xf32>
    %39 = arith.addf %31, %38 : vector<8x128xf32>
    %40 = vector.extract_strided_slice %1 {offsets = [1, 0], sizes = [1, 128], strides = [1, 1]} : vector<4x128xf32> to vector<1x128xf32>
    %41 = vector.extract_strided_slice %0 {offsets = [0, 5], sizes = [8, 1], strides = [1, 1]} : vector<8x8xf32> to vector<8x1xf32>
    %42 = vector.broadcast %40 : vector<1x128xf32> to vector<8x128xf32>
    %43 = vector.broadcast %41 : vector<8x1xf32> to vector<8x128xf32>
    %44 = arith.mulf %42, %43 : vector<8x128xf32>
    %45 = arith.addf %37, %44 : vector<8x128xf32>
    %46 = arith.mulf %44, %44 : vector<8x128xf32>
    %47 = arith.addf %39, %46 : vector<8x128xf32>
    %48 = vector.extract_strided_slice %1 {offsets = [2, 0], sizes = [1, 128], strides = [1, 1]} : vector<4x128xf32> to vector<1x128xf32>
    %49 = vector.extract_strided_slice %0 {offsets = [0, 6], sizes = [8, 1], strides = [1, 1]} : vector<8x8xf32> to vector<8x1xf32>
    %50 = vector.broadcast %48 : vector<1x128xf32> to vector<8x128xf32>
    %51 = vector.broadcast %49 : vector<8x1xf32> to vector<8x128xf32>
    %52 = arith.mulf %50, %51 : vector<8x128xf32>
    %53 = arith.addf %45, %52 : vector<8x128xf32>
    %54 = arith.mulf %52, %52 : vector<8x128xf32>
    %55 = arith.addf %47, %54 : vector<8x128xf32>
    %56 = vector.extract_strided_slice %1 {offsets = [3, 0], sizes = [1, 128], strides = [1, 1]} : vector<4x128xf32> to vector<1x128xf32>
    %57 = vector.extract_strided_slice %0 {offsets = [0, 7], sizes = [8, 1], strides = [1, 1]} : vector<8x8xf32> to vector<8x1xf32>
    %58 = vector.broadcast %56 : vector<1x128xf32> to vector<8x128xf32>
    %59 = vector.broadcast %57 : vector<8x1xf32> to vector<8x128xf32>
    %60 = arith.mulf %58, %59 : vector<8x128xf32>
    %61 = arith.addf %53, %60 : vector<8x128xf32>
    %62 = arith.mulf %60, %60 : vector<8x128xf32>
    %63 = arith.addf %55, %62 : vector<8x128xf32>
    %64 = arith.mulf %61, %61 : vector<8x128xf32>
    %65 = arith.subf %64, %63 : vector<8x128xf32>
    %cst_9 = arith.constant dense<0.000000e+00> : vector<8xf32>
    %66 = vector.multi_reduction <add>, %65, %cst_9 [1] : vector<8x128xf32> to vector<8xf32>
    %67 = vector.shape_cast %66 : vector<8xf32> to vector<8x1xf32>
    %cst_10 = arith.constant 5.000000e-01 : f32
    %68 = vector.broadcast %cst_10 : f32 to vector<8x1xf32>
    %69 = arith.mulf %68, %67 : vector<8x1xf32>
    %c0_11 = arith.constant 0 : index
    %c0_12 = arith.constant 0 : index
    %70 = vector.load %arg3[%c0_11, %c0_12] : memref<8x4xf32, #tpu.memory_space<vmem>>, vector<8x4xf32>
    %cst_13 = arith.constant dense<0.000000e+00> : vector<8xf32>
    %71 = vector.multi_reduction <add>, %70, %cst_13 [1] : vector<8x4xf32> to vector<8xf32>
    %72 = vector.shape_cast %71 : vector<8xf32> to vector<8x1xf32>
    %73 = vector.extract_strided_slice %0 {offsets = [0, 4], sizes = [8, 4], strides = [1, 1]} : vector<8x8xf32> to vector<8x4xf32>
    %cst_14 = arith.constant dense<0.000000e+00> : vector<8xf32>
    %74 = vector.multi_reduction <add>, %73, %cst_14 [1] : vector<8x4xf32> to vector<8xf32>
    %75 = vector.shape_cast %74 : vector<8xf32> to vector<8x1xf32>
    %76 = arith.addf %72, %75 : vector<8x1xf32>
    %77 = arith.addf %76, %69 : vector<8x1xf32>
    %78 = arith.negf %77 : vector<8x1xf32>
    %79 = math.exp %78 : vector<8x1xf32>
    %cst_15 = arith.constant 1.000000e+00 : f32
    %80 = vector.broadcast %cst_15 : f32 to vector<8x1xf32>
    %81 = arith.addf %80, %79 : vector<8x1xf32>
    %82 = arith.divf %80, %81 : vector<8x1xf32>
    %c0_16 = arith.constant 0 : index
    %c0_17 = arith.constant 0 : index
    %83 = vector.load %arg5[%c0_16, %c0_17] : memref<8x1xf32, #tpu.memory_space<vmem>>, vector<8x1xf32>
    tpu.vector_store %arg5[%c0_16, %c0_17], %82 {strides = array<i32>} : memref<8x1xf32, #tpu.memory_space<vmem>>, vector<8x1xf32>,
    return
  }
  func.func @transform_0(%arg0: i32) -> (i32, i32) {
    %c0_i32 = arith.constant 0 : i32
    %c0_i32_0 = arith.constant 0 : i32
    return %arg0, %c0_i32 : i32, i32
  }
  func.func @transform_1(%arg0: i32) -> (i32, i32) {
    %c0_i32 = arith.constant 0 : i32
    %c0_i32_0 = arith.constant 0 : i32
    return %arg0, %c0_i32 : i32, i32
  }
  func.func @transform_2(%arg0: i32) -> (i32, i32) {
    %c0_i32 = arith.constant 0 : i32
    %c0_i32_0 = arith.constant 0 : i32
    return %arg0, %c0_i32 : i32, i32
  }
  func.func @transform_3(%arg0: i32) -> (i32, i32) {
    %c0_i32 = arith.constant 0 : i32
    %c0_i32_0 = arith.constant 0 : i32
    %c0_i32_1 = arith.constant 0 : i32
    return %c0_i32, %c0_i32_0 : i32, i32
  }
  func.func @transform_4(%arg0: i32) -> (i32, i32) {
    %c0_i32 = arith.constant 0 : i32
    %c0_i32_0 = arith.constant 0 : i32
    return %arg0, %c0_i32 : i32, i32
  }
}

</mosaic_0001>

<bundles_post_ra>
// kernel: tpu_custom_call.1
= control target key start
LH: loop header
LB: loop body
LE: loop exit
PB: predicated region body
PF: predicated region fallthrough
CT: control target
= control target key end

     0   :  { %9 = vsyncpa [#allocation3], 0  ;;  %s747_s0 = inlined_call_operand.hbm [shape: f32[32,512], index: 0, kind: input, shape index: {}]   ;;  %s748_s1 = inlined_call_operand.vmem [shape: f32[32,8], index: 1, kind: input, shape index: {}]   ;;  %s749_s2 = inlined_call_operand.vmem [shape: f32[32,4], index: 2, kind: input, shape index: {}]   ;;  %s750_s3 = inlined_call_operand.vmem [shape: f32[4,128], index: 3, kind: input, shape index: {}]   ;;  %s751_s4 = inlined_call_operand.vmem [shape: f32[32,1], index: 4, kind: output, shape index: {}]  }
   0x1   :  { %11 = vsyncpa [#allocation3 + $0x1], 0  ;;  %s625_s15 = smov 0   ;;  %s627_s16 = smov 0  }
   0x2   :  { %s629_s17 = smov 0   ;;  %s631_s18 = smov 0  }
   0x3 LB: > { %s644_s19 = sadd.s32 4294967295, %s588_s18   ;;  %s647_s20 = sadd.s32 1, %s588_s18   ;;  %s588_s18 = sphi %s631_s18, %s761_s18   ;;  %s584_s17 = sphi %s629_s17, %s760_s17   ;;  %s580_s16 = sphi %s627_s16, %s759_s16   ;;  %s576_s15 = sphi %s625_s15, %s758_s15  }
   0x4   : > { %s21_s21 = ssub.s32 %s588_s18, %s647_s20  ;;  %s24_s22 = sadd.s32 1, %s584_s17 }
   0x5   : > { %p22_p0 = scmp.eq.s32.totalorder %s21_s21, 0  ;;  %p31_p1 = scmp.ne.s32.totalorder %s584_s17, %s580_s16 }
   0x6   : > { %p32_p2 = scmp.eq.s32.totalorder %s588_s18, 0  ;;  %p37_p3 = scmp.ne.s32.totalorder %s580_s16, %s576_s15 }
   0x7   : > { %s657_s23 = scalar_select %p22_p0, %s584_s17, %s24_s22  }
   0x8   : > { %p33_p4 = por %p32_p2, %p31_p1  ;;  %p38_p5 = scmp.eq.s32.totalorder %s644_s19, 0 }
   0x9   : > { %p471_p6 = scmp.lt.s32.totalorder %s588_s18, 4  ;;  %s163_s25 = sand.u32 1, %s584_s17  }
   0xa   : > { %p661_p7 = por %p38_p5, %p37_p3  ;;  %s453_s26 = sshll.u32 %s163_s25, 5 }
   0xb   : > { %s464_s27 = sshll.u32 %s588_s18, 9  ;;  %s167_s5 = scalar_lea.vmem [#allocation2], %s453_s26 }
   0xc   : > { %s753_s24 = scalar_select %p661_p7, 1, 0 }
   0xd   : > { %s670_s30 = scalar_lea.hbm %s747_s0, %s464_s27  ;;  %s175_s6 = sshll.u32 %s167_s5, 4  ;;  %s672_s6 = int_to_ptr.vmem [resolvable:$true] %s175_s6 }
   0xe   : > { %p674_p8 = pnand %p471_p6, %p33_p4  ;;  %s164_s8 = scalar_lea.sflag [#allocation3], %s163_s25 }
   0xf   : > { %s526_s9 = scalar_lea.hbm %s670_s30, 512  ;;  %s531_s12 = scalar_lea.hbm %s747_s0, 2048 }
  0x10   : > { %p527_p11 = scmp.ne.s32.totalorder %s670_s30, %s526_s9  ;;  %p528_p12 = pneg %p674_p8 }
  0x11   : > { %p532_p1 = scmp.lt.s32.totalorder %s670_s30, %s747_s0  ;;  %p533_p2 = scmp.lt.s32.totalorder %s531_s12, %s526_s9 }
  0x12   : > { %p529_p13 = pnand %p528_p12, %p527_p11 }
  0x13   : > { %p534_p3 = por %p533_p2, %p532_p1 }
  0x14   : > { %p530_p0 = pneg %p529_p13 }
  0x16   : > { %p535_p4 = pnand %p534_p3, %p530_p0 }
  0x18   : > { %538 = shalt.err (!%p535_p4)
}
  0x19   : > { %s539_s15 = scalar_lea.vmem %s672_s6, 512  ;;  %s590_s21 = smov [#allocation2]  }
  0x1a   : > { %p540_p5 = scmp.ne.s32.totalorder %s672_s6, %s539_s15  ;;  %s544_s22 = sshll.u32 %s590_s21, 4  ;;  %s545_s22 = int_to_ptr.vmem [resolvable:$false] %s544_s22 }
  0x1b   : > { %s546_s25 = scalar_lea.vmem %s545_s22, 1024  ;;  %p547_p13 = scmp.lt.s32.totalorder %s672_s6, %s545_s22 }
  0x1c   : > { %p542_p6 = pnand %p540_p5, %p528_p12  ;;  %p548_p9 = scmp.lt.s32.totalorder %s546_s25, %s539_s15 }
  0x1e   : > { %p543_p11 = pneg %p542_p6  ;;  %p549_p10 = por %p548_p9, %p547_p13 }
  0x20   : > { %p550_p7 = pnand %p549_p10, %p543_p11 }
  0x22   : > { %553 = shalt.err (!%p550_p7)
}
  0x23   : > { %470 = dma.hbm_to_vmem [thread:$0]  (!%p674_p8), %s670_s30, 512, %s672_s6, %s164_s8  }
  0x24   : > { %p755_p0 = scmp.lt.s32.totalorder %s588_s18, 5  ;;  %p756_p1 = scmp.ge.s32.totalorder %s588_s18, 1 }
  0x26   : > { %p195_p12 = pnand %p756_p1, %p755_p0 }
  0x27   : > { %s200_s26 = sand.u32 (!%p195_p12), 1, %s580_s16   ;;  %p757_p9 = scmp.ne.s32.totalorder (!%p195_p12), %s753_s24, 0 }
  0x28   : > { %198 = sbr.rel (%p195_p12) target bundleno = 379 (0x17b), region = 36  ;;  %s457_s27 = sshll.u32 (!%p195_p12), %s200_s26, 5 }
  0x29   : > { %s201_s28 = scalar_lea.sflag (!%p195_p12), [#allocation3], %s200_s26  ;;  %s703_s29 = scalar_lea.vmem (!%p195_p12), [#allocation2], %s457_s27 }
  0x2d   : > { %571 = dma.done.wait (%p757_p9), %s201_s28, 512  }
  0x2e   : > { %573 = vsyncadd (%p757_p9), %s201_s28, 4294966784  ;;  %p236_p7 = scmp.lt.s32.totalorder %s644_s19, 3  ;;  %v591_v0 = vmov 2   ;;  %v592_v1 = vmov 0   ;;  %v593_v3 = vmov 3   ;;  %v594_v4 = vmov 1  }
  0x2f   : > { %515 = vset.pattern.permute.xlu1 %v591_v0  ;;  %513 = vset.pattern.permute.xlu0 %v592_v1  ;;  %v595_v5 = vmov 4   ;;  %v596_v6 = vmov 5   ;;  %v597_v7 = vmov 6   ;;  %v599_v8 = vmov 7   ;;  %v250_v15 = vld [vmem:[%s703_s29] sm:$0xff]  ;;  %v269_v16 = vld [vmem:[%s703_s29 + $0x10] sm:$0xff] }
  0x30   : > { %s763_s19 = smov (!%p236_p7, %s644_s19), 3  ;;  %vm341_vm0 = vcmask 31744   ;;  %v287_v11 = vlaneseq  ;;  %v260_v17 = vld [vmem:[%s703_s29 + $0x8] sm:$0xff]  ;;  %v249_v21 = vld [vmem:[%s750_s3] sm:$0xf]  ;;  %v278_v22 = vld [vmem:[%s703_s29 + $0x18] sm:$0xff] }
  0x31   : > { %s711_s18 = sshll.u32 %s763_s19, 3  ;;  %s598_s19 = smov 124   ;;  %vm359_vm1 = vcmask 7168  }
  0x32   : > { %s239_s6 = scalar_lea.vmem %s748_s1, %s711_s18  ;;  %s243_s8 = scalar_lea.vmem %s749_s2, %s711_s18  ;;  %v288_v12 = vshrl.u32 %v287_v11, 7 }
  0x33   : > { %v248_v2 = vld [vmem:[%s239_s6] sm:$0xff]  ;;  %s247_s13 = scalar_lea.vmem %s751_s4, %s711_s18 }
  0x34   : > { %271 = vperm.xlu1 %515, %v248_v2   ;;  %253 = vperm.xlu0 %513, %v248_v2   ;;  %v340_v9 = vld [vmem:[%s243_s8] sm:$0xff]  ;;  %v289_v18 = vsub.s32 0, %v288_v12  ;;  %v301_v19 = vsub.s32 1, %v288_v12  ;;  %v313_v29 = vsub.s32 2, %v288_v12  ;;  %v325_v46 = vsub.s32 3, %v288_v12 }
  0x35   : > { %v342_v10 = vsel %vm341_vm0, %v340_v9, 0.0 }
  0x36   : > { %v290_v27 = vrot.slane %v249_v21, %v289_v18  ;;  %v302_v28 = vrot.slane %v249_v21, %v301_v19  ;;  %v314_v44 = vrot.slane %v249_v21, %v313_v29  ;;  %v326_v56 = vrot.slane %v249_v21, %v325_v46 }
  0x38   : > { %516 = vset.pattern.permute.xlu1 %v593_v3  ;;  %514 = vset.pattern.permute.xlu0 %v594_v4 }
  0x39   : > { %280 = vperm.xlu1 %516, %v248_v2   ;;  %262 = vperm.xlu0 %514, %v248_v2  }
  0x3d   : > { %517 = vset.pattern.permute.xlu1 %v595_v5  ;;  %518 = vset.pattern.permute.xlu0 %v596_v6 }
  0x3e   : > { %292 = vperm.xlu1 %517, %v248_v2   ;;  %304 = vperm.xlu0 %518, %v248_v2  }
  0x42   : > { %519 = vset.pattern.permute.xlu1 %v597_v7  ;;  %345 = vrot.lane.b32.xlu0 %v248_v2, %s598_s19 }
  0x43   : > { %316 = vperm.xlu1 %519, %v248_v2   ;;  %521 = vset.pattern.permute.xlu0 %v599_v8 }
  0x47   : > { %520 = vset.pattern.permute.xlu1 %v599_v8 }
  0x48   : > { %328 = vperm.xlu1 %520, %v248_v2  }
  0x61   : > { %343 = vadd.xlane.f32.xlu0 %v342_v10 }
  0xaf   : > { %v272_v13 = vpop.permute.xlu1 %271  ;;  %v254_v14 = vpop.permute.xlu0 %253 }
  0xb0   : > { %v256_v20 = vmul.f32 %v254_v14, %v250_v15  ;;  %v274_v25 = vmul.f32 %v272_v13, %v269_v16 }
  0xb2   : > { %v258_v30 = vmul.f32 %v256_v20, %v256_v20  ;;  %v276_v34 = vmul.f32 %v274_v25, %v274_v25 }
  0xb4   : > { %v281_v23 = vpop.permute.xlu1 %280  ;;  %v263_v24 = vpop.permute.xlu0 %262 }
  0xb5   : > { %v265_v26 = vmul.f32 %v263_v24, %v260_v17  ;;  %v283_v31 = vmul.f32 %v281_v23, %v278_v22 }
  0xb7   : > { %v266_v32 = vadd.f32 %v265_v26, %v256_v20  ;;  %v267_v33 = vmul.f32 %v265_v26, %v265_v26  ;;  %v285_v41 = vmul.f32 %v283_v31, %v283_v31 }
  0xb9   : > { %v268_v35 = vadd.f32 %v267_v33, %v258_v30  ;;  %v275_v36 = vadd.f32 %v274_v25, %v266_v32  ;;  %v293_v37 = vpop.permute.xlu1 %292  ;;  %v305_v38 = vpop.permute.xlu0 %304 }
  0xba   : > { %v295_v39 = vmul.f32 %v293_v37, %v290_v27  ;;  %v307_v40 = vmul.f32 %v305_v38, %v302_v28 }
  0xbb   : > { %v277_v42 = vadd.f32 %v276_v34, %v268_v35  ;;  %v284_v43 = vadd.f32 %v283_v31, %v275_v36 }
  0xbc   : > { %v297_v45 = vmul.f32 %v295_v39, %v295_v39  ;;  %v309_v50 = vmul.f32 %v307_v40, %v307_v40 }
  0xbd   : > { %v286_v47 = vadd.f32 %v285_v41, %v277_v42  ;;  %v296_v48 = vadd.f32 %v295_v39, %v284_v43  ;;  %v346_v49 = vpop.permute.xlu0 %345 }
  0xbe   : > { %v317_v51 = vpop.permute.xlu1 %316  ;;  %v348_v52 = vsel %vm341_vm0, %v346_v49, 0.0 }
  0xbf   : > { %v298_v53 = vadd.f32 %v297_v45, %v286_v47  ;;  %v319_v54 = vmul.f32 %v317_v51, %v314_v44  ;;  %349 = vadd.xlane.f32.xlu0 %v348_v52  ;;  %v308_v55 = vadd.f32 %v307_v40, %v296_v48 }
  0xc1   : > { %v310_v57 = vadd.f32 %v309_v50, %v298_v53  ;;  %v321_v58 = vmul.f32 %v319_v54, %v319_v54  ;;  %v320_v60 = vadd.f32 %v319_v54, %v308_v55 }
  0xc3   : > { %v329_v59 = vpop.permute.xlu1 %328  ;;  %v322_v62 = vadd.f32 %v321_v58, %v310_v57 }
  0xc4   : > { %v331_v61 = vmul.f32 %v329_v59, %v326_v56 }
  0xc6   : > { %v332_v63 = vadd.f32 %v331_v61, %v320_v60  ;;  %v333_v0 = vmul.f32 %v331_v61, %v331_v61 }
  0xc8   : > { %v335_v1 = vmul.f32 %v332_v63, %v332_v63  ;;  %v334_v2 = vadd.f32 %v333_v0, %v322_v62 }
  0xca   : > { %v336_v3 = vsub.f32 %v335_v1, %v334_v2 }
  0xcc   : > { %337 = vadd.xlane.f32.xlu1 %v336_v3 }
  0xea   : > { %v344_v4 = vpop.xlane.xlu0 %343 }
 0x148   : > { %v350_v5 = vpop.xlane.xlu0 %349 }
 0x149   : > { %v351_v7 = vadd.f32 %v350_v5, %v344_v4 }
 0x155   : > { %v338_v6 = vpop.xlane.xlu1 %337 }
 0x156   : > { %v339_v8 = vmul.f32 0.5, %v338_v6 }
 0x158   : > { %v352_v9 = vadd.f32 %v351_v7, %v339_v8 }
 0x15a   : > { %v461_v10 = vmul.f32 -1.442695, %v352_v9 }
 0x15c   : > { %522 = vpow2.f32 %v461_v10 }
 0x169   : > { %v523_v11 = vpop.eup %522 }
 0x16a   : > { %v356_v12 = vadd.f32 1.0, %v523_v11 }
 0x16c   : > { %524 = vrcp.f32 %v356_v12 }
 0x179   : > { %v525_v13 = vpop.eup %524 }
 0x17a   : > { %360 = vst.msk [vmem:[%s247_s13] sm:$0xff] %vm359_vm1, %v525_v13 }
 0x17b PF: > { %p14_p8 = scmp.ge.s32.totalorder %s647_s20, 6   ;;  %s758_s15 = smov %s580_s16 }
 0x17c   : > { %s759_s16 = smov %s584_s17  ;;  %s760_s17 = smov %s657_s23 }
 0x17d   : > { %s761_s18 = smov %s647_s20  ;;  %16 = sbr.rel (!%p14_p8) target bundleno = 3 (0x3), region = 82 }
 0x182   :  { %380 = vsyncpa [#allocation3], 1 }
 0x183   :  { %382 = vsyncpa [#allocation3 + $0x1], 1 }

</bundles_post_ra>
